<compile_context>
chip_gen: v7x
topology: tpu7x:2x2x1
jax: 0.10.0
libtpu: 0.0.40
codegen_flags: <defaults>
</compile_context>

<pallas_src>
import jax
import jax.numpy as jnp
from jax import lax
from jax.experimental import pallas as pl
from jax.experimental.pallas import tpu as pltpu


# ----------------------------- Pallas kernel ------------------------------ #

def _folded_matmul_kernel(w_ref, x_ref, o_ref):
    # w_ref: (M, Kc)      resident folded weight (bf16)
    # x_ref: (1, Kc, T)   lane-dense input slab (spatial on lanes, bf16)
    # o_ref: (1, M, T)    lane-dense, channel-major output slab (f32)
    o_ref[0] = jnp.dot(
        w_ref[...], x_ref[0], preferred_element_type=jnp.float32
    ).astype(o_ref.dtype)


def _pick_hw_tile(hw, max_tile=2048):
    """Largest lane-tile (multiple of 128) dividing hw, capped at max_tile."""
    if hw <= max_tile or hw % 128 != 0:
        return hw
    for t in range(max_tile, 127, -128):
        if hw % t == 0:
            return t
    return hw


def _folded_matmul(w_fold, x_fold, out_dtype, compute_dtype):
    """out[n, m, hw] = sum_k w_fold[m, k] * x_fold[n, k, hw]."""
    M, Kc = w_fold.shape
    N, Kc2, HW = x_fold.shape
    assert Kc == Kc2
    hw_tile = _pick_hw_tile(HW)
    grid = (N, HW // hw_tile)
    return pl.pallas_call(
        _folded_matmul_kernel,
        out_shape=jax.ShapeDtypeStruct((N, M, HW), out_dtype),
        grid_spec=pltpu.PrefetchScalarGridSpec(
            num_scalar_prefetch=0,
            grid=grid,
            in_specs=[
                # Tiny weight: full array, constant index_map -> stays resident.
                pl.BlockSpec((M, Kc), lambda n, h: (0, 0)),
                pl.BlockSpec((1, Kc, hw_tile), lambda n, h: (n, 0, h)),
            ],
            out_specs=pl.BlockSpec((1, M, hw_tile), lambda n, h: (n, 0, h)),
        ),
        compiler_params=pltpu.CompilerParams(
            dimension_semantics=("parallel", "parallel"),
            vmem_limit_bytes=32 * 1024 * 1024,
        ),
    )(w_fold.astype(compute_dtype), x_fold.astype(compute_dtype))


# ------------------------- glue: operand folding --------------------------- #

def _polyphase_fold(x_nchw, weight, stride, padding):
    """Polyphase fold for the default config (K=3, s=2, p=1, op=1, d=1).

    y[n,co,S*a+py,S*b+px] = sum_{ci,dy,dx} W[py,px,dy,dx][co,ci] * x[n,ci,a+dy,b+dx]
    with tap (ky,kx) = (py+p-S*dy, px+p-S*dx) when in range, else 0.
    """
    N, C_in, H, W = x_nchw.shape
    _, C_out, K, _ = weight.shape
    S = stride
    d_max = (S - 1 + padding) // S                      # == 1 for the defaults

    xp = jnp.pad(x_nchw, ((0, 0), (0, 0), (0, d_max), (0, d_max)))
    slabs = []
    for dy in range(d_max + 1):
        for dx in range(d_max + 1):
            slabs.append(xp[:, :, dy:dy + H, dx:dx + W])
    x_fold = jnp.concatenate(slabs, axis=1).reshape(N, -1, H * W)

    w_t = jnp.transpose(weight, (1, 0, 2, 3))           # (C_out, C_in, K, K)
    zero_blk = jnp.zeros((C_out, C_in), weight.dtype)
    rows = []
    for py in range(S):
        for px in range(S):
            cols = []
            for dy in range(d_max + 1):
                for dx in range(d_max + 1):
                    ky = py + padding - S * dy
                    kx = px + padding - S * dx
                    if 0 <= ky < K and 0 <= kx < K:
                        cols.append(w_t[:, :, ky, kx])
                    else:
                        cols.append(zero_blk)
            rows.append(jnp.concatenate(cols, axis=1))
    w_fold = jnp.concatenate(rows, axis=0)              # (S*S*C_out, D*C_in)
    return x_fold, w_fold


def _polyphase_unfold(out, N, C_out, S, H, W):
    # out: (N, S*S*C_out, H*W), row block p = py*S + px
    y = out.reshape(N, S, S, C_out, H, W)               # (n, py, px, co, a, b)
    y = jnp.transpose(y, (0, 3, 4, 1, 5, 2))            # (n, co, a, py, b, px)
    return y.reshape(N, C_out, S * H, S * W)


def _im2col_fold(x_nchw, weight, stride, padding, dilation, output_padding):
    """General path: conv with flipped kernel over zero-inserted input."""
    N, C_in, H, W = x_nchw.shape
    _, C_out, K, _ = weight.shape
    H_out = (H - 1) * stride - 2 * padding + dilation * (K - 1) + output_padding + 1
    W_out = (W - 1) * stride - 2 * padding + dilation * (K - 1) + output_padding + 1
    H_up, W_up = (H - 1) * stride + 1, (W - 1) * stride + 1
    x_up = jnp.zeros((N, C_in, H_up, W_up), x_nchw.dtype)
    x_up = x_up.at[:, :, ::stride, ::stride].set(x_nchw)
    pad_lo = dilation * (K - 1) - padding
    pad_hi = pad_lo + output_padding
    x_pad = jnp.pad(x_up, ((0, 0), (0, 0), (pad_lo, pad_hi), (pad_lo, pad_hi)))
    taps = []
    for ky in range(K):
        for kx in range(K):
            sy, sx = ky * dilation, kx * dilation
            taps.append(x_pad[:, :, sy:sy + H_out, sx:sx + W_out]
                        .reshape(N, C_in, H_out * W_out))
    x_fold = jnp.concatenate(taps, axis=1)              # (N, K*K*C_in, HW_out)
    w_flip = weight[:, :, ::-1, ::-1]                   # (C_in, C_out, K, K)
    w_fold = jnp.transpose(w_flip, (1, 2, 3, 0)).reshape(C_out, K * K * C_in)
    return x_fold, w_fold, H_out, W_out


# ------------------------------ public API --------------------------------- #

def deconv2d(x_nchw, weight, *, stride=2, padding=1, dilation=1,
             output_padding=1, compute_dtype=jnp.bfloat16, method="auto"):
    """ConvTranspose2d forward matching PyTorch semantics (bias=False)."""
    N, C_in, H, W = x_nchw.shape
    wc_in, C_out, K, Kw = weight.shape
    assert wc_in == C_in and K == Kw
    out_dtype = x_nchw.dtype

    # Cast BEFORE folding: the pad/concat wrapper ops then move half the bytes.
    x_c = x_nchw.astype(compute_dtype)
    w_c = weight.astype(compute_dtype)

    is_default_cfg = (K == 3 and stride == 2 and padding == 1
                      and dilation == 1 and output_padding == 1)
    use_poly = (method == "polyphase") or (method == "auto" and is_default_cfg)

    if use_poly:
        assert is_default_cfg, "polyphase fast path only for the default config"
        x_fold, w_fold = _polyphase_fold(x_c, w_c, stride, padding)
        out = _folded_matmul(w_fold, x_fold, out_dtype, compute_dtype)
        return _polyphase_unfold(out, N, C_out, stride, H, W)

    x_fold, w_fold, H_out, W_out = _im2col_fold(
        x_c, w_c, stride, padding, dilation, output_padding)
    out = _folded_matmul(w_fold, x_fold, out_dtype, compute_dtype)
    return out.reshape(N, C_out, H_out, W_out)          # already channel-major


# ------------------------------ reference ---------------------------------- #

def _reference_deconv2d(x_nchw, weight, *, stride=2, padding=1, dilation=1,
                        output_padding=1, precision=None):
    """Pure-JAX reference (lax.conv_general_dilated)."""
    C_in, C_out, K, _ = weight.shape
    x = jnp.transpose(x_nchw, (0, 2, 3, 1))                           # NHWC
    w_hwio = jnp.transpose(weight[:, :, ::-1, ::-1], (2, 3, 0, 1))    # HWIO
    pad_lo = dilation * (K - 1) - padding
    pad_hi = pad_lo + output_padding
    y = lax.conv_general_dilated(
        x, w_hwio, window_strides=(1, 1),
        padding=[(pad_lo, pad_hi), (pad_lo, pad_hi)],
        lhs_dilation=(stride, stride), rhs_dilation=(dilation, dilation),
        dimension_numbers=("NHWC", "HWIO", "NHWC"),
        precision=precision)
    return jnp.transpose(y, (0, 3, 1, 2))


if __name__ == "__main__":
    # Deconv2d(nch_in=4, nch_out=8) on a (2, 4, 16, 16) NCHW input.
    key = jax.random.PRNGKey(0)
    kx, kw = jax.random.split(key)
    N, C_in, H, W = 2, 4, 16, 16
    C_out, K = 8, 3

    x = jax.random.normal(kx, (N, C_in, H, W), dtype=jnp.float32)
    # PyTorch ConvTranspose2d weight layout: (C_in, C_out, kH, kW)
    weight = 0.1 * jax.random.normal(kw, (C_in, C_out, K, K), dtype=jnp.float32)

    y_poly = jax.block_until_ready(deconv2d(x, weight))               # polyphase
    assert y_poly.shape == (N, C_out, 2 * H, 2 * W), y_poly.shape

    y_im2col = jax.block_until_ready(deconv2d(x, weight, method="im2col"))
    assert y_im2col.shape == y_poly.shape

    # Tight structural check: reference computed from the SAME bf16-rounded
    # operands (kernel uses bf16 MXU inputs with f32 accumulation).
    xb = x.astype(jnp.bfloat16).astype(jnp.float32)
    wb = weight.astype(jnp.bfloat16).astype(jnp.float32)
    y_ref_b = jax.block_until_ready(
        _reference_deconv2d(xb, wb, precision=lax.Precision.HIGHEST))
    assert jnp.allclose(y_poly, y_ref_b, atol=1e-3, rtol=1e-3), (
        float(jnp.max(jnp.abs(y_poly - y_ref_b))))
    assert jnp.allclose(y_im2col, y_ref_b, atol=1e-3, rtol=1e-3), (
        float(jnp.max(jnp.abs(y_im2col - y_ref_b))))

    # Semantic sanity check against the full-f32 reference (bf16 input tol).
    y_ref = jax.block_until_ready(
        _reference_deconv2d(x, weight, precision=lax.Precision.HIGHEST))
    assert jnp.allclose(y_poly, y_ref, atol=3e-2, rtol=3e-2), (
        float(jnp.max(jnp.abs(y_poly - y_ref))))

    print("KERNEL_OK")
</pallas_src>

<mosaic_0001>
module attributes {stable_mosaic.version = 11 : i64} {
  func.func @_folded_matmul_kernel(%arg0: i32, %arg1: i32, %arg2: memref<32x16xbf16, #tpu.memory_space<vmem>>, %arg3: memref<1x16x256xbf16, #tpu.memory_space<vmem>>, %arg4: memref<1x32x256xf32, #tpu.memory_space<vmem>>) attributes {dimension_semantics = [#tpu.dimension_semantics<parallel>, #tpu.dimension_semantics<parallel>], iteration_bounds = array<i64: 2, 1>, scalar_prefetch = 0 : i64, scratch_operands = 0 : i64, tpu.core_type = #tpu.core_type<tc>, window_params = [{pipeline_mode = #tpu.pipeline_mode<synchronous>, transform_indices = @transform_0, window_bounds = array<i64: 32, 16>}, {transform_indices = @transform_1, window_bounds = array<i64: 1, 16, 256>}, {transform_indices = @transform_2, window_bounds = array<i64: 1, 32, 256>}]} {
    %c0 = arith.constant 0 : index
    %c0_0 = arith.constant 0 : index
    %0 = vector.load %arg2[%c0, %c0_0] : memref<32x16xbf16, #tpu.memory_space<vmem>>, vector<32x16xbf16>
    %c0_1 = arith.constant 0 : index
    %c0_2 = arith.constant 0 : index
    %c0_3 = arith.constant 0 : index
    %1 = vector.load %arg3[%c0_1, %c0_2, %c0_3] : memref<1x16x256xbf16, #tpu.memory_space<vmem>>, vector<1x16x256xbf16>
    %2 = vector.shape_cast %1 : vector<1x16x256xbf16> to vector<16x256xbf16>
    %cst = arith.constant dense<0.000000e+00> : vector<32x256xf32>
    %3 = tpu.matmul %0, %2, %cst {dimension_numbers = #tpu.dot_dimension_numbers<[1], [0], [0], [1], [0, 0, 1, 1], [], []>} : vector<32x16xbf16>, vector<16x256xbf16>, vector<32x256xf32> -> vector<32x256xf32>
    %c0_4 = arith.constant 0 : index
    %c0_5 = arith.constant 0 : index
    %c0_6 = arith.constant 0 : index
    %4 = vector.load %arg4[%c0_4, %c0_5, %c0_6] : memref<1x32x256xf32, #tpu.memory_space<vmem>>, vector<1x32x256xf32>
    %5 = vector.shape_cast %4 : vector<1x32x256xf32> to vector<32x256xf32>
    %6 = vector.shape_cast %3 : vector<32x256xf32> to vector<1x32x256xf32>
    tpu.vector_store %arg4[%c0_4, %c0_5, %c0_6], %6 {strides = array<i32>} : memref<1x32x256xf32, #tpu.memory_space<vmem>>, vector<1x32x256xf32>,
    return
  }
  func.func @transform_0(%arg0: i32, %arg1: i32) -> (i32, i32) {
    %c0_i32 = arith.constant 0 : i32
    %c0_i32_0 = arith.constant 0 : i32
    %c0_i32_1 = arith.constant 0 : i32
    return %c0_i32, %c0_i32_0 : i32, i32
  }
  func.func @transform_1(%arg0: i32, %arg1: i32) -> (i32, i32, i32) {
    %c0_i32 = arith.constant 0 : i32
    %c0_i32_0 = arith.constant 0 : i32
    return %arg0, %c0_i32, %arg1 : i32, i32, i32
  }
  func.func @transform_2(%arg0: i32, %arg1: i32) -> (i32, i32, i32) {
    %c0_i32 = arith.constant 0 : i32
    %c0_i32_0 = arith.constant 0 : i32
    return %arg0, %c0_i32, %arg1 : i32, i32, i32
  }
}

</mosaic_0001>

<bundles_post_ra>
// kernel: tpu_custom_call.1
= control target key start
LH: loop header
LB: loop body
LE: loop exit
PB: predicated region body
PF: predicated region fallthrough
CT: control target
= control target key end

     0   :  { %7 = vsyncpa [#allocation3], 0  ;;  %s795_s0 = inlined_call_operand.vmem [shape: bf16[32,16], index: 0, kind: input, shape index: {}]   ;;  %s796_s1 = inlined_call_operand.hbm [shape: bf16[2,16,256], index: 1, kind: input, shape index: {}]   ;;  %s797_s2 = inlined_call_operand.hbm [shape: f32[2,32,256], index: 2, kind: output, shape index: {}]  }
   0x1   :  { %9 = vsyncpa [#allocation3 + $0x1], 0 }
   0x2   :  { %10 = vsyncpa [#allocation4], 0 }
   0x3   :  { %12 = vsyncpa [#allocation4 + $0x1], 0  ;;  %s613_s9 = smov 0   ;;  %s615_s10 = smov 0  }
   0x4   :  { %s617_s11 = smov 0   ;;  %s619_s12 = smov 0  }
   0x5   :  { %s621_s13 = smov 0   ;;  %s623_s14 = smov 0  }
   0x6 LB: > { %s380_s15 = sadd.s32 4294967295, %s589_s14   ;;  %s381_s16 = sadd.s32 4294967294, %s589_s14   ;;  %s589_s14 = sphi %s623_s14, %s18_s14   ;;  %s585_s13 = sphi %s621_s13, %s812_s13   ;;  %s581_s12 = sphi %s619_s12, %s811_s12   ;;  %s577_s11 = sphi %s617_s11, %s810_s11   ;;  %s573_s10 = sphi %s615_s10, %s809_s10   ;;  %s569_s9 = sphi %s613_s9, %s808_s9  }
   0x7   : > { %s30_s17 = sadd.s32 1, %s585_s13  ;;  %s60_s18 = sadd.s32 1, %s577_s11 }
   0x8   : > { %p32_p0 = scmp.ge.s32.totalorder %s30_s17, 2  ;;  %p67_p1 = scmp.ne.s32.totalorder %s577_s11, %s573_s10 }
   0x9   : > { %p68_p2 = scmp.eq.s32.totalorder %s589_s14, 0  ;;  %p73_p3 = scmp.ne.s32.totalorder %s573_s10, %s569_s9 }
   0xa   : > { %s814_s17 = smov (%p32_p0, %s30_s17), 0  ;;  %p74_p5 = scmp.eq.s32.totalorder %s380_s15, 0 }
   0xb   : > { %p654_p4 = por %p68_p2, %p67_p1  ;;  %s55_s20 = ssub.s32 %s585_s13, %s814_s17 }
   0xc   : > { %p99_p6 = scmp.eq.s32.totalorder %s380_s15, 1  ;;  %p58_p7 = scmp.eq.s32.totalorder %s55_s20, 0 }
   0xd   : > { %p660_p8 = por %p74_p5, %p73_p3  ;;  %p105_p10 = scmp.eq.s32.totalorder %s381_s16, 1 }
   0xe   : > { %p664_p9 = por %p99_p6, %p67_p1  ;;  %p417_p13 = scmp.lt.s32.totalorder %s589_s14, 2 }
   0xf   : > { %s669_s23 = scalar_select %p58_p7, %s577_s11, %s60_s18  }
  0x10   : > { %s801_s22 = scalar_select %p664_p9, 1, 0 }
  0x11   : > { %p671_p11 = por %p105_p10, %p73_p3  ;;  %s128_s25 = sand.u32 1, %s577_s11  }
  0x12   : > { %s384_s26 = sshll.u32 %s128_s25, 4  ;;  %s401_s27 = sshll.u32 %s585_s13, 8 }
  0x13   : > { %s802_s24 = scalar_select %p671_p11, 1, 0 }
  0x14   : > { %s682_s30 = scalar_lea.hbm %s796_s1, %s401_s27  ;;  %s132_s3 = scalar_lea.vmem [#allocation2], %s384_s26 }
  0x15   : > { %s141_s4 = sshll.u32 %s132_s3, 4  ;;  %p688_p0 = pnand %p417_p13, %p654_p4  ;;  %s684_s4 = int_to_ptr.vmem [resolvable:$true] %s141_s4 }
  0x16   : > { %s693_s6 = scalar_lea.sflag [#allocation3], %s128_s25  ;;  %s477_s7 = scalar_lea.hbm %s682_s30, 256 }
  0x17   : > { %p478_p2 = scmp.ne.s32.totalorder %s682_s30, %s477_s7  ;;  %p479_p3 = pneg %p688_p0 }
  0x18   : > { %s482_s16 = scalar_lea.hbm %s796_s1, 512  ;;  %p483_p4 = scmp.lt.u32.totalorder %s682_s30, %s796_s1 }
  0x19   : > { %p480_p5 = pnand %p479_p3, %p478_p2  ;;  %p484_p7 = scmp.lt.u32.totalorder %s482_s16, %s477_s7 }
  0x1a   : > { %p486_p13 = scmp.lt.u32.totalorder %s477_s7, %s682_s30 }
  0x1b   : > { %p481_p6 = pneg %p480_p5  ;;  %p485_p10 = por %p484_p7, %p483_p4 }
  0x1d   : > { %p487_p12 = por %p486_p13, %p485_p10 }
  0x1f   : > { %p488_p1 = pnand %p487_p12, %p481_p6 }
  0x21   : > { %491 = shalt.err (!%p488_p1)
}
  0x22   : > { %s492_s20 = scalar_lea.vmem %s684_s4, 256  ;;  %s591_s25 = smov [#allocation2]  }
  0x23   : > { %p493_p2 = scmp.ne.s32.totalorder %s684_s4, %s492_s20  ;;  %s497_s26 = sshll.u32 %s591_s25, 4  ;;  %s498_s26 = int_to_ptr.vmem [resolvable:$false] %s497_s26 }
  0x24   : > { %s499_s27 = scalar_lea.vmem %s498_s26, 512  ;;  %p500_p9 = scmp.lt.s32.totalorder %s684_s4, %s498_s26 }
  0x25   : > { %p495_p5 = pnand %p493_p2, %p479_p3  ;;  %p501_p4 = scmp.lt.s32.totalorder %s499_s27, %s492_s20 }
  0x27   : > { %p496_p11 = pneg %p495_p5  ;;  %p502_p7 = por %p501_p4, %p500_p9 }
  0x29   : > { %p503_p10 = pnand %p502_p7, %p496_p11 }
  0x2b   : > { %506 = shalt.err (!%p503_p10)
}
  0x2c   : > { %s592_s28 = smov 128   ;;  %s593_s29 = smov 8  }
  0x2d   : > { %412 = dma.hbm_to_vmem [thread:$0]  (!%p688_p0), %s682_s30, 256, %s684_s4, %s693_s6, %s592_s28, %s592_s28, %s593_s29  }
  0x2e   : > { %p149_p12 = scmp.lt.s32.totalorder %s589_s14, 3  ;;  %p804_p1 = scmp.ge.s32.totalorder %s589_s14, 1 }
  0x30   : > { %p150_p3 = pnand %p804_p1, %p149_p12 }
  0x31   : > { %s725_s3 = sand.u32 (!%p150_p3), 1, %s573_s10  }
  0x32   : > { %153 = sbr.rel (%p150_p3) target bundleno = 294 (0x126), region = 28  ;;  %s388_s7 = sshll.u32 (!%p150_p3), %s725_s3, 4 }
  0x33   : > { %s156_s8 = scalar_lea.sflag (!%p150_p3), [#allocation3], %s725_s3  ;;  %s159_s15 = scalar_lea.vmem (!%p150_p3), [#allocation2], %s388_s7 }
  0x39   : > { %560 = dma.done.wait (%p660_p8), %s156_s8, 256  }
  0x3a   : > { %562 = vsyncadd (%p660_p8), %s156_s8, 4294967040  ;;  %v594_v0 = vmov 0   ;;  %v472_v1 = vld [vmem:[%s159_s15 + $0x4] ss:$8 sps:$4 sm:$0xff]   ;;  %v474_v2 = vld [vmem:[%s159_s15] ss:$8 sps:$4 sm:$0xff]  }
  0x3b   : > { %248 = vmatprep.mubr.bf16.mxu0 %v594_v0  ;;  %258 = vmatprep.mubr.bf16.mxu1 %v594_v0  ;;  %v475_v3 = vld [vmem:[%s795_s0] sm:$0xff]   ;;  %vm209_vm0 = vcmask 130048   ;;  %v476_v4 = vld [vmem:[%s795_s0 + $0x8] sm:$0xff]   ;;  %s389_s21 = sshll.u32 %s725_s3, 6  ;;  %s402_s19 = sshll.u32 %s581_s12, 10 }
  0x3c   : > { %216 = vmatprep.subr.bf16.mxu0 %v472_v1  ;;  %403 = vmatprep.subr.bf16.mxu1 %v472_v1  ;;  %s179_s16 = scalar_lea.vmem [#allocation5], %s389_s21  ;;  %s746_s26 = scalar_lea.hbm %s797_s2, %s402_s19 }
  0x3d   : > { %217 = vmatpush1.bf16.msra.mxu0 %v474_v2  ;;  %404 = vmatpush1.bf16.msra.mxu1 %v474_v2  ;;  %s293_s18 = sshll.u32 %s179_s16, 4  ;;  %s278_s12 = scalar_lea.sflag [#allocation4], %s725_s3  ;;  %s741_s18 = int_to_ptr.vmem [resolvable:$true] %s293_s18 }
  0x3e   : > { %s507_s27 = scalar_lea.vmem %s741_s18, 1024  ;;  %p805_p9 = scmp.ne.s32.totalorder %s801_s22, 0 }
  0x3f   : > { %p508_p8 = scmp.ne.s32.totalorder %s741_s18, %s507_s27  ;;  %s595_s28 = smov [#allocation5]  }
  0x40   : > { %394 = vmatmul.mubr.msk.bf16.vlgmr.msra.gmra.mrb[0].mxu0 %vm209_vm0, %v475_v3  ;;  %395 = vmatmul.mubr.msk.bf16.vlgmr.msra.gmra.mrb[0].mxu1 %vm209_vm0, %v476_v4  ;;  %s511_s29 = sshll.u32 %s595_s28, 4  ;;  %s512_s29 = int_to_ptr.vmem [resolvable:$false] %s511_s29 }
  0x41   : > { %p509_p11 = pnand %p508_p8, %p805_p9  ;;  %s513_s7 = scalar_lea.vmem %s512_s29, 2048 }
  0x42   : > { %p514_p6 = scmp.lt.s32.totalorder %s741_s18, %s512_s29  ;;  %p515_p13 = scmp.lt.s32.totalorder %s513_s7, %s507_s27 }
  0x43   : > { %p510_p0 = pneg %p509_p11 }
  0x44   : > { %p516_p2 = por %p515_p13, %p514_p6 }
  0x46   : > { %p517_p5 = pnand %p516_p2, %p510_p0 }
 0x113   : > { %v250_v5 = vpop.f32.mrb[0].mxu0  ;;  %v260_v6 = vpop.f32.mrb[0].mxu1 }
 0x114   : > { %269 = vst [vmem:[%s179_s16] sm:$0xff] %v250_v5  ;;  %273 = vst [vmem:[%s179_s16 + $0x20] sm:$0xff] %v260_v6  ;;  %v252_v7 = vpop.f32.mrb[1].mxu0  ;;  %v262_v8 = vpop.f32.mrb[1].mxu1 }
 0x115   : > { %270 = vst [vmem:[%s179_s16 + $0x8] sm:$0xff] %v252_v7  ;;  %274 = vst [vmem:[%s179_s16 + $0x28] sm:$0xff] %v262_v8  ;;  %v254_v9 = vpop.f32.mrb[2].mxu0  ;;  %v264_v10 = vpop.f32.mrb[2].mxu1 }
 0x116   : > { %271 = vst [vmem:[%s179_s16 + $0x10] sm:$0xff] %v254_v9  ;;  %275 = vst [vmem:[%s179_s16 + $0x30] sm:$0xff] %v264_v10  ;;  %v256_v11 = vpop.f32.mrb[3].mxu0  ;;  %v266_v12 = vpop.f32.mrb[3].mxu1 }
 0x117   : > { %272 = vst [vmem:[%s179_s16 + $0x18] sm:$0xff] %v256_v11  ;;  %276 = vst [vmem:[%s179_s16 + $0x38] sm:$0xff] %v266_v12 }
 0x118   : > { %520 = shalt.err (!%p517_p5)
}
 0x119   : > { %s521_s8 = scalar_lea.hbm %s746_s26, 1024  ;;  %s525_s4 = scalar_lea.hbm %s797_s2, 2048 }
 0x11a   : > { %p522_p4 = scmp.ne.s32.totalorder %s746_s26, %s521_s8  ;;  %p526_p12 = scmp.lt.u32.totalorder %s746_s26, %s797_s2 }
 0x11b   : > { %p527_p1 = scmp.lt.u32.totalorder %s525_s4, %s521_s8  ;;  %p529_p8 = scmp.lt.u32.totalorder %s521_s8, %s746_s26 }
 0x11c   : > { %p523_p7 = pnand %p522_p4, %p805_p9 }
 0x11d   : > { %p528_p3 = por %p527_p1, %p526_p12 }
 0x11e   : > { %p524_p10 = pneg %p523_p7 }
 0x11f   : > { %p530_p11 = por %p529_p8, %p528_p3 }
 0x121   : > { %p531_p0 = pnand %p530_p11, %p524_p10 }
 0x123   : > { %534 = shalt.err (!%p531_p0)
}
 0x124   : > { %s596_s21 = smov 256   ;;  %s597_s16 = smov 16  }
 0x125   : > { %407 = dma.vmem_to_hbm [thread:$0]  (%p805_p9), %s741_s18, 1024, %s746_s26, %s278_s12, %s596_s21, %s596_s21, %s597_s16  }
 0x126 PF: > { %s308_s19 = sand.u32 1, %s569_s9   ;;  %p806_p6 = scmp.ne.s32.totalorder %s802_s24, 0 }
 0x127   : > { %p807_p13 = scmp.ge.s32.totalorder %s589_s14, 2  ;;  %s309_s20 = scalar_lea.sflag [#allocation4], %s308_s19 }
 0x129   : > { %p414_p2 = pnand %p807_p13, %p806_p6 }
 0x12b   : > { %564 = dma.done.wait (!%p414_p2), %s309_s20, 1024  }
 0x12c   : > { %566 = vsyncadd (!%p414_p2), %s309_s20, 4294966272  ;;  %s18_s14 = sadd.s32 1, %s589_s14   ;;  %s808_s9 = smov %s573_s10 }
 0x12d   : > { %p15_p5 = scmp.ge.s32.totalorder %s18_s14, 4   ;;  %s809_s10 = smov %s577_s11 }
 0x12e   : > { %s810_s11 = smov %s669_s23  ;;  %s811_s12 = smov %s585_s13 }
 0x12f   : > { %s812_s13 = smov %s814_s17  ;;  %17 = sbr.rel (!%p15_p5) target bundleno = 6 (0x6), region = 73 }
 0x136   :  { %314 = vsyncpa [#allocation3], 1 }
 0x137   :  { %316 = vsyncpa [#allocation3 + $0x1], 1 }
 0x138   :  { %317 = vsyncpa [#allocation4], 1 }
 0x139   :  { %319 = vsyncpa [#allocation4 + $0x1], 1 }

</bundles_post_ra>
